<compile_context>
chip_gen: v7x
topology: tpu7x:2x2x1
jax: 0.10.0
libtpu: 0.0.40
codegen_flags: <defaults>
</compile_context>

<pallas_src>
import math
import functools

import numpy as np
import jax
import jax.numpy as jnp
from jax.experimental import pallas as pl
from jax.experimental.pallas import tpu as pltpu


def _round_up(x, m):
    return ((x + m - 1) // m) * m


# ---------------------------------------------------------------------------
# Pallas kernels
# ---------------------------------------------------------------------------

def _mm_bias_kernel(a_ref, b_ref, bias_ref, o_ref):
    o_ref[...] = (jnp.dot(a_ref[...], b_ref[...],
                          preferred_element_type=jnp.float32)
                  + bias_ref[...])


@functools.lru_cache(maxsize=None)
def _matmul_callable(Mp, K, N, tm):
    fn = pl.pallas_call(
        _mm_bias_kernel,
        out_shape=jax.ShapeDtypeStruct((Mp, N), jnp.float32),
        grid=(Mp // tm,),
        in_specs=[pl.BlockSpec((tm, K), lambda i: (i, 0)),
                  pl.BlockSpec((K, N), lambda i: (0, 0)),
                  pl.BlockSpec((1, N), lambda i: (0, 0))],
        out_specs=pl.BlockSpec((tm, N), lambda i: (i, 0)),
        compiler_params=pltpu.CompilerParams(
            dimension_semantics=("parallel",)),
    )
    return jax.jit(fn)


def pallas_matmul(a, b, bias=None, tm=512):
    """(M, K) @ (K, N) [+ bias] -> (M, N) f32; bf16 MXU operands.

    K and N stay un-padded (full-dim blocks, one grid axis over rows), so no
    128-wide zero slabs are materialised in HBM; the bias add is fused into the
    kernel epilogue.
    """
    a = jnp.asarray(a)
    b = jnp.asarray(b)
    M, K = a.shape
    N = b.shape[1]
    if K % 8:                                 # keep contraction sublane-aligned
        kpad = 8 - (K % 8)
        a = jnp.pad(a, ((0, 0), (0, kpad)))
        b = jnp.pad(b, ((0, kpad), (0, 0)))
        K += kpad
    tm_eff = min(tm, _round_up(M, 8))
    Mp = _round_up(M, tm_eff)
    a_b = a.astype(jnp.bfloat16)
    if Mp != M:
        a_b = jnp.pad(a_b, ((0, Mp - M), (0, 0)))
    b_b = b.astype(jnp.bfloat16)
    if bias is None:
        bias_arr = jnp.zeros((1, N), jnp.float32)
    else:
        bias_arr = jnp.asarray(bias, jnp.float32).reshape(1, N)
    out = _matmul_callable(Mp, K, N, tm_eff)(a_b, b_b, bias_arr)
    return out[:M]


def _graph_kernel(x_ref, a_ref, o_ref):
    # out[b, t, u] = sum_v x[b, t, v] * a[b, v, u]
    o_ref[...] = jax.lax.dot_general(
        x_ref[...], a_ref[...],
        dimension_numbers=(((2,), (1,)), ((0,), (0,))),
        preferred_element_type=jnp.float32)


@functools.lru_cache(maxsize=None)
def _graph_callable(Bp, T, V, U, Bb):
    fn = pl.pallas_call(
        _graph_kernel,
        out_shape=jax.ShapeDtypeStruct((Bp, T, U), jnp.float32),
        grid=(Bp // Bb,),
        in_specs=[pl.BlockSpec((Bb, T, V), lambda i: (i, 0, 0)),
                  pl.BlockSpec((Bb, V, U), lambda i: (i, 0, 0))],
        out_specs=pl.BlockSpec((Bb, T, U), lambda i: (i, 0, 0)),
        compiler_params=pltpu.CompilerParams(
            dimension_semantics=("parallel",)),
    )
    return jax.jit(fn)


def graph_matmul(x, a, Bb=16):
    """Batched contraction out[b,t,u] = sum_v x[b,t,v] * a[b,v,u]."""
    B, T, V = x.shape
    U = a.shape[2]
    Bp = _round_up(B, Bb)
    x_b = x.astype(jnp.bfloat16)
    a_b = a.astype(jnp.bfloat16)
    if Bp != B:
        x_b = jnp.pad(x_b, ((0, Bp - B), (0, 0), (0, 0)))
        a_b = jnp.pad(a_b, ((0, Bp - B), (0, 0), (0, 0)))
    out = _graph_callable(Bp, T, V, U, Bb)(x_b, a_b)
    return out[:B]


# ---------------------------------------------------------------------------
# Channels-last glue layers built on the Pallas kernels.
# ---------------------------------------------------------------------------

def conv1x1_cl(x, w, b=None):
    """Pointwise (1x1) conv on channels-last input; w: (Cout, Cin)."""
    cin = x.shape[-1]
    cout = w.shape[0]
    y = pallas_matmul(x.reshape(-1, cin), jnp.transpose(w), b)
    return y.reshape(x.shape[:-1] + (cout,))


def bn_cl(x, p, eps=1e-5):
    """BatchNorm over all but the channel (last) axis, training-mode batch stats."""
    axes = tuple(range(x.ndim - 1))
    mean = jnp.mean(x, axis=axes, keepdims=True)
    var = jnp.var(x, axis=axes, keepdims=True)
    return (x - mean) * jax.lax.rsqrt(var + eps) * p['gamma'] + p['beta']


def bn1d(x, p, eps=1e-5):
    if x.ndim == 3:                                      # (N, C, T)
        mean = jnp.mean(x, axis=(0, 2), keepdims=True)
        var = jnp.var(x, axis=(0, 2), keepdims=True)
        return ((x - mean) * jax.lax.rsqrt(var + eps)
                * p['gamma'][None, :, None] + p['beta'][None, :, None])
    mean = jnp.mean(x, axis=0)
    var = jnp.var(x, axis=0)
    return (x - mean) * jax.lax.rsqrt(var + eps) * p['gamma'] + p['beta']


def temporal_conv_cl(x, w, b, stride, dilation):
    """Conv2d with kernel (k, 1) on channels-last (NM, T, V, C); w: (Cout, Cin, k)."""
    NM, T, V, C = x.shape
    cout, _, k = w.shape
    pad = (k + (k - 1) * (dilation - 1) - 1) // 2
    xp = jnp.pad(x, ((0, 0), (pad, pad), (0, 0), (0, 0)))
    t_out = (T + 2 * pad - (dilation * (k - 1) + 1)) // stride + 1
    span = (t_out - 1) * stride + 1
    # TODO(synk): im2col materialisation; a kt-grid-axis Pallas accumulation
    # would avoid the k-fold activation copy, kept simple here (branch channels
    # are only Cout/4 so the inflation is modest).
    cols = [xp[:, kt * dilation: kt * dilation + span: stride] for kt in range(k)]
    xcol = jnp.stack(cols, axis=-1)                      # (NM, t_out, V, C, k)
    y = pallas_matmul(xcol.reshape(-1, C * k), w.reshape(cout, C * k).T, b)
    return y.reshape(NM, t_out, V, cout)


def maxpool_t_cl(x, stride):
    """MaxPool2d kernel (3,1), padding (1,0), stride (stride,1), channels-last."""
    NM, T, V, C = x.shape
    xp = jnp.pad(x, ((0, 0), (1, 1), (0, 0), (0, 0)), constant_values=-jnp.inf)
    t_out = (T - 1) // stride + 1
    span = (t_out - 1) * stride + 1
    cols = [xp[:, kt: kt + span: stride] for kt in range(3)]
    return jnp.maximum(jnp.maximum(cols[0], cols[1]), cols[2])


def unit_tcn_forward(p, x, stride):
    return bn_cl(temporal_conv_cl(x, p['w'], p['b'], stride, 1), p['bn'])


# ---------------------------------------------------------------------------
# Module forwards (all channels-last).
# ---------------------------------------------------------------------------

def unit_gcn_forward(p, x):
    """unit_gcn: three CTR-GC sub-graphs, fused w1/w2/w3 conv + batched graph matmul."""
    NM, T, V, Cin = x.shape
    A = p['PA']
    nsub = A.shape[0]
    convs = p['convs']
    rel = convs[0]['w1'].shape[0]
    cout = convs[0]['w3'].shape[0]
    per = 2 * rel + cout

    # One matmul for conv1/conv2/conv3 of all three subsets.
    w_f = jnp.concatenate(
        [jnp.concatenate([c['w1'], c['w2'], c['w3']], axis=0) for c in convs], axis=0)
    b_f = jnp.concatenate(
        [jnp.concatenate([c['b1'], c['b2'], c['b3']]) for c in convs])
    h = conv1x1_cl(x, w_f, b_f)                          # (NM, T, V, nsub*per)

    a_parts, x3_parts = [], []
    for i, c in enumerate(convs):
        off = i * per
        h1 = jnp.mean(h[..., off:off + rel], axis=1)             # (NM, V, rel)
        h2 = jnp.mean(h[..., off + rel:off + 2 * rel], axis=1)   # (NM, V, rel)
        x3 = h[..., off + 2 * rel:off + per]                     # (NM, T, V, cout)
        d = jnp.tanh(h1[:, :, None, :] - h2[:, None, :, :])      # (NM, U, V, rel)
        a = conv1x1_cl(d, c['w4'], c['b4'])                      # (NM, U, V, cout)
        a = a * p['alpha'] + A[i][None, :, :, None]
        a_parts.append(jnp.transpose(a, (0, 3, 2, 1)))           # (NM, cout, V, U)
        x3_parts.append(x3)

    # Batched graph contraction over (clip, subset, channel).
    a_all = jnp.stack(a_parts, axis=1).reshape(NM * nsub * cout, V, V)
    x3_all = jnp.concatenate(x3_parts, axis=-1)                  # (NM, T, V, nsub*cout)
    x3_b = jnp.transpose(x3_all, (0, 3, 1, 2)).reshape(NM * nsub * cout, T, V)
    y = graph_matmul(x3_b, a_all)                                # (B, T, U)
    y = y.reshape(NM, nsub, cout, T, V).sum(axis=1)              # (NM, cout, T, U)
    y = jnp.transpose(y, (0, 2, 3, 1))                           # (NM, T, U, cout)

    y = bn_cl(y, p['bn'])
    if p['down'] is None:
        y = y + x
    else:
        y = y + bn_cl(conv1x1_cl(x, p['down']['w'], p['down']['b']), p['down']['bn'])
    return jax.nn.relu(y)


def mstcn_forward(p, x, stride):
    """MultiScale_TemporalConv (residual=False in every use inside cv_TCN_GCN_unit)."""
    brs = p['branches']
    bc = brs[0]['w1'].shape[0]
    # Fuse the four branch 1x1 convs into one lane-dense matmul.
    w_f = jnp.concatenate([br['w1'] for br in brs], axis=0)      # (4*bc, C)
    b_f = jnp.concatenate([br['b1'] for br in brs])
    h = conv1x1_cl(x, w_f, b_f)                                  # (NM, T, V, 4*bc)

    outs = []
    for bi in range(2):                                          # dilated temporal branches
        br = brs[bi]
        hb = jax.nn.relu(bn_cl(h[..., bi * bc:(bi + 1) * bc], br['bn1']))
        hb = temporal_conv_cl(hb, br['wt'], br['bt'], stride, br['dilation'])
        outs.append(bn_cl(hb, br['bnt']))
    br = brs[2]                                                  # max-pool branch
    hb = jax.nn.relu(bn_cl(h[..., 2 * bc:3 * bc], br['bn1']))
    outs.append(bn_cl(maxpool_t_cl(hb, stride), br['bn2']))
    br = brs[3]                                                  # strided 1x1 branch
    outs.append(bn_cl(h[:, ::stride, :, 3 * bc:4 * bc], br['bn1']))
    return jnp.concatenate(outs, axis=-1)


def st_att_forward(p, x):
    """ST_Joint_Att on channels-last input."""
    NM, T, V, C = x.shape
    x_t = jnp.mean(x, axis=2)                                    # (NM, T, C)
    x_v = jnp.mean(x, axis=1)                                    # (NM, V, C)
    h = conv1x1_cl(jnp.concatenate([x_t, x_v], axis=1), p['w_fcn'], p['b_fcn'])
    h = bn_cl(h, p['bn'])
    h = h * jax.nn.relu6(h + 3.0) / 6.0                          # Hardswish
    h_t, h_v = h[:, :T, :], h[:, T:, :]
    att_t = jax.nn.sigmoid(conv1x1_cl(h_t, p['w_t'], p['b_t']))  # (NM, T, C)
    att_v = jax.nn.sigmoid(conv1x1_cl(h_v, p['w_v'], p['b_v']))  # (NM, V, C)
    return x * (att_t[:, :, None, :] * att_v[:, None, :, :])


def _residual(p, x):
    kind, rp = p['residual']
    if kind == 'zero':
        return 0.0
    if kind == 'id':
        return x
    return unit_tcn_forward(rp, x, p['stride'])


def cv_unit_forward(p, x, case, vlist):
    stride = p['stride']
    if case == 0:
        y = mstcn_forward(p['tcn1'], unit_gcn_forward(p['gcn1'], x), stride)
        return jax.nn.relu(y + _residual(p, x))

    # case == 1 : cross-view mixing path (clips x 2 persons)
    temp = x
    x = unit_gcn_forward(p['gcn1'], x)
    NM, T, V, C = x.shape
    nclips = NM // 2
    vl = jnp.asarray(vlist, dtype=jnp.int32)

    x5 = x.reshape(nclips, 2, T, V, C)
    keep_v = jnp.asarray(np.random.choice([0, 1], size=(nclips, V)) == 0)
    # TODO(synk): reference mixes into float16 buffers (.half()); kept f32 here
    # (the heavy matmuls already run in bf16 on the MXU).
    z = jnp.where(keep_v[:, None, None, :, None], x5, x5[vl]).reshape(NM, T, V, C)

    z = mstcn_forward(p['tcn1'], unit_gcn_forward(p['gcn2'], z), stride)
    T2, V2, C2 = z.shape[1:]
    z5 = z.reshape(nclips, 2, T2, V2, C2)
    keep_t = jnp.asarray(np.random.choice([0, 1], size=(nclips, T2)) == 0)
    m = jnp.where(keep_t[:, None, :, None, None], z5, z5[vl]).reshape(NM, T2, V2, C2)

    y = mstcn_forward(p['tcn2'], m, 1)
    return jax.nn.relu(y + _residual(p, temp))


def transform_shape(x):
    """_transform_shape: (N, 3014, 150) -> (N, 3, 100, 25, 2)."""
    def half(a):
        n = a.shape[0]
        t = jnp.transpose(a.reshape(n, 3014, 25, 3), (0, 3, 1, 2))   # (N, 3, 3014, 25)
        return t[:, :, 1:200:2, :]                                   # frames 1,3,...,199
    return jnp.stack([half(x[:, :, :75]), half(x[:, :, 75:])], axis=4)


def model_forward(P, x):
    # x: (N, C, T, V, M)
    N, C, T, V, M = x.shape
    xr = jnp.transpose(x, (0, 4, 3, 1, 2)).reshape(N, M * V * C, T)
    xr = bn1d(xr, P['data_bn'])
    x = jnp.transpose(xr.reshape(N, M, V, C, T), (0, 1, 4, 2, 3)).reshape(N * M, T, V, C)

    # TODO(synk): the reference hard-codes 16 clips for vlist / the mixing
    # buffers; parametrised by the actual clip count here.
    vlist = list(range(N))
    np.random.shuffle(vlist)

    xcv = x
    layer_names = ['l1', 'l2', 'l3', 'l4', 'l5', 'l6', 'l7', 'l8', 'l9', 'l10']
    atts = {'l1': 'att1', 'l5': 'att2', 'l8': 'att3'}
    for name in layer_names:
        x = cv_unit_forward(P[name], x, 0, vlist)
        xcv = cv_unit_forward(P[name], xcv, 1, vlist)
        if name in atts:
            x = st_att_forward(P[atts[name]], x)

    c_new = x.shape[-1]
    x = x.reshape(N, M, -1, c_new).mean(axis=2).mean(axis=1)       # (N, c_new)
    xcv = xcv.reshape(N, M, -1, c_new).mean(axis=2).mean(axis=1)

    tempcv = xcv
    tempv = x - xcv

    def fc(v):
        return pallas_matmul(v, P['fc_w'].T, P['fc_b'])

    outv = fc(jax.nn.relu(bn1d(tempv, P['bn1'])))
    outp = fc(jax.nn.relu(bn1d(tempcv, P['bn1'])))
    fv = pallas_matmul(jax.nn.relu(bn1d(outv, P['bn'])), P['protov_w'].T)
    return outv, outp, fv


def my_ctrgcn_forward(params, x, viewt=None):
    """MyCTRGCN.forward (DataParallel wrapper is a no-op; viewt unused by the reference)."""
    x = transform_shape(x)
    # joint-motion temporal difference; last frame stays zero.
    xjmo = jnp.concatenate([x[:, :, 1:] - x[:, :, :-1],
                            jnp.zeros_like(x[:, :, :1])], axis=2)
    # TODO(synk): reference builds xjmo as float16 (.half()); kept float32
    # (bf16 is used for all MXU operands inside the Pallas kernels).
    return model_forward(params['encoder'], xjmo)


# ---------------------------------------------------------------------------
# Deterministic parameter construction (shapes mirror the PyTorch __init__).
# ---------------------------------------------------------------------------

class ParamInit:
    def __init__(self, seed=42):
        self._key = jax.random.PRNGKey(seed)

    def normal(self, shape, std):
        self._key, k = jax.random.split(self._key)
        return std * jax.random.normal(k, shape, jnp.float32)


def _bn_params(c, scale=1.0):
    return {'gamma': jnp.full((c,), scale, jnp.float32),
            'beta': jnp.zeros((c,), jnp.float32)}


def _make_ctrgc(init, cin, cout):
    rel = 8 if cin in (3, 9) else cin // 8
    return {
        'w1': init.normal((rel, cin), math.sqrt(2.0 / rel)), 'b1': jnp.zeros((rel,), jnp.float32),
        'w2': init.normal((rel, cin), math.sqrt(2.0 / rel)), 'b2': jnp.zeros((rel,), jnp.float32),
        'w3': init.normal((cout, cin), math.sqrt(2.0 / cout)), 'b3': jnp.zeros((cout,), jnp.float32),
        'w4': init.normal((cout, rel), math.sqrt(2.0 / cout)), 'b4': jnp.zeros((cout,), jnp.float32),
    }


def _make_unit_gcn(init, cin, cout, A):
    p = {'convs': [_make_ctrgc(init, cin, cout) for _ in range(A.shape[0])],
         'PA': jnp.asarray(A, jnp.float32),
         'alpha': jnp.zeros((), jnp.float32),
         'bn': _bn_params(cout, 1e-6),
         'down': None}
    if cin != cout:
        p['down'] = {'w': init.normal((cout, cin), math.sqrt(2.0 / cout)),
                     'b': jnp.zeros((cout,), jnp.float32), 'bn': _bn_params(cout)}
    return p


def _make_mstcn(init, cin, cout, kernel_size=5, dilations=(1, 2)):
    bc = cout // (len(dilations) + 2)
    branches = []
    for dil in dilations:
        branches.append({
            'w1': init.normal((bc, cin), math.sqrt(2.0 / bc)), 'b1': jnp.zeros((bc,), jnp.float32),
            'bn1': _bn_params(bc),
            'wt': init.normal((bc, bc, kernel_size), math.sqrt(2.0 / (bc * kernel_size))),
            'bt': jnp.zeros((bc,), jnp.float32), 'bnt': _bn_params(bc), 'dilation': dil})
    branches.append({'w1': init.normal((bc, cin), math.sqrt(2.0 / bc)),
                     'b1': jnp.zeros((bc,), jnp.float32), 'bn1': _bn_params(bc),
                     'bn2': _bn_params(bc)})
    branches.append({'w1': init.normal((bc, cin), math.sqrt(2.0 / bc)),
                     'b1': jnp.zeros((bc,), jnp.float32), 'bn1': _bn_params(bc)})
    return {'branches': branches}


def _make_unit_tcn(init, cin, cout, k=1):
    return {'w': init.normal((cout, cin, k), math.sqrt(2.0 / (cout * k))),
            'b': jnp.zeros((cout,), jnp.float32), 'bn': _bn_params(cout)}


def _make_st_att(init, ch):
    inner = ch // 4
    return {'w_fcn': init.normal((inner, ch), math.sqrt(2.0 / inner)),
            'b_fcn': jnp.zeros((inner,), jnp.float32), 'bn': _bn_params(inner),
            'w_t': init.normal((ch, inner), math.sqrt(2.0 / ch)), 'b_t': jnp.zeros((ch,), jnp.float32),
            'w_v': init.normal((ch, inner), math.sqrt(2.0 / ch)), 'b_v': jnp.zeros((ch,), jnp.float32)}


def _make_cv_unit(init, cin, cout, A, stride=1, residual=True):
    p = {'gcn1': _make_unit_gcn(init, cin, cout, A),
         'gcn2': _make_unit_gcn(init, cout, cout, A),
         'tcn1': _make_mstcn(init, cout, cout),
         'tcn2': _make_mstcn(init, cout, cout),
         'stride': stride}
    if not residual:
        p['residual'] = ('zero', None)
    elif cin == cout and stride == 1:
        p['residual'] = ('id', None)
    else:
        p['residual'] = ('tcn', _make_unit_tcn(init, cin, cout, 1))
    return p


def build_adjacency(num_point=25):
    # TODO(synk): AdjMatrixGraph is an external dependency not provided in the
    # reference; use a deterministic synthetic 3-subset binary adjacency
    # (identity, inward ring, outward ring) with the standard CTR-GCN shape.
    I = np.eye(num_point, dtype=np.float32)
    ring = np.zeros((num_point, num_point), dtype=np.float32)
    for i in range(num_point):
        ring[i, (i + 1) % num_point] = 1.0
    return np.stack([I, ring, ring.T], axis=0)


def build_params(seed=42, base=64, feat_dim=128, num_view=8, num_point=25):
    # TODO(synk): the reference uses base_channel=64; the smoke test below uses
    # base=16 so the full 10-layer forward (x + cross-view paths) stays fast.
    init = ParamInit(seed)
    A = build_adjacency(num_point)
    P = {'data_bn': _bn_params(2 * 3 * num_point)}
    P['l1'] = _make_cv_unit(init, 3, base, A, residual=False)
    P['l2'] = _make_cv_unit(init, base, base, A)
    P['l3'] = _make_cv_unit(init, base, base, A)
    P['l4'] = _make_cv_unit(init, base, base, A)
    P['l5'] = _make_cv_unit(init, base, base * 2, A, stride=2)
    P['l6'] = _make_cv_unit(init, base * 2, base * 2, A)
    P['l7'] = _make_cv_unit(init, base * 2, base * 2, A)
    P['l8'] = _make_cv_unit(init, base * 2, base * 4, A, stride=2)
    P['l9'] = _make_cv_unit(init, base * 4, base * 4, A)
    P['l10'] = _make_cv_unit(init, base * 4, base * 4, A)
    P['att1'] = _make_st_att(init, base)
    P['att2'] = _make_st_att(init, base * 2)
    P['att3'] = _make_st_att(init, base * 4)
    P['fc_w'] = init.normal((feat_dim, base * 4), math.sqrt(2.0 / feat_dim))
    P['fc_b'] = jnp.zeros((feat_dim,), jnp.float32)
    P['bn'] = _bn_params(feat_dim)
    P['bn1'] = _bn_params(base * 4)
    P['protov_w'] = init.normal((num_view, feat_dim), math.sqrt(2.0 / num_view))
    return {'encoder': P}


# ---------------------------------------------------------------------------
# main
# ---------------------------------------------------------------------------

if __name__ == "__main__":
    np.random.seed(0)            # deterministic vlist shuffle + mixing masks
    # Small smoke-test config: 2 clips x 2 persons, base_channel=16.  The raw
    # (3014 frames, 150 = 2 persons * 25 joints * 3 coords) layout is fixed by
    # _transform_shape, so that part of the input shape is kept exact.
    num_clips = 2
    params = build_params(seed=42, base=16)

    key = jax.random.PRNGKey(0)
    x = jax.random.normal(key, (num_clips, 3014, 150), dtype=jnp.float32)
    viewt = jnp.zeros((num_clips,), jnp.int32)   # unused by the reference forward

    outv, outp, fv = my_ctrgcn_forward(params, x, viewt)
    outv, outp, fv = jax.block_until_ready((outv, outp, fv))

    assert outv.shape == (num_clips, 128), outv.shape
    assert outp.shape == (num_clips, 128), outp.shape
    assert fv.shape == (num_clips, 8), fv.shape
    assert (bool(jnp.all(jnp.isfinite(outv)))
            and bool(jnp.all(jnp.isfinite(outp)))
            and bool(jnp.all(jnp.isfinite(fv))))
    print("KERNEL_OK")
</pallas_src>

<mosaic_0001>
module attributes {stable_mosaic.version = 11 : i64} {
  func.func @_mm_bias_kernel(%arg0: i32, %arg1: memref<512x8xbf16, #tpu.memory_space<vmem>>, %arg2: memref<8x96xbf16, #tpu.memory_space<vmem>>, %arg3: memref<1x96xf32, #tpu.memory_space<vmem>>, %arg4: memref<512x96xf32, #tpu.memory_space<vmem>>) attributes {dimension_semantics = [#tpu.dimension_semantics<parallel>], iteration_bounds = array<i64: 20>, scalar_prefetch = 0 : i64, scratch_operands = 0 : i64, tpu.core_type = #tpu.core_type<tc>, window_params = [{transform_indices = @transform_0, window_bounds = array<i64: 512, 8>}, {pipeline_mode = #tpu.pipeline_mode<synchronous>, transform_indices = @transform_1, window_bounds = array<i64: 8, 96>}, {pipeline_mode = #tpu.pipeline_mode<synchronous>, transform_indices = @transform_2, window_bounds = array<i64: 1, 96>}, {transform_indices = @transform_3, window_bounds = array<i64: 512, 96>}]} {
    %c0 = arith.constant 0 : index
    %c0_0 = arith.constant 0 : index
    %0 = vector.load %arg1[%c0, %c0_0] : memref<512x8xbf16, #tpu.memory_space<vmem>>, vector<512x8xbf16>
    %c0_1 = arith.constant 0 : index
    %c0_2 = arith.constant 0 : index
    %1 = vector.load %arg2[%c0_1, %c0_2] : memref<8x96xbf16, #tpu.memory_space<vmem>>, vector<8x96xbf16>
    %cst = arith.constant dense<0.000000e+00> : vector<512x96xf32>
    %2 = tpu.matmul %0, %1, %cst {dimension_numbers = #tpu.dot_dimension_numbers<[1], [0], [0], [1], [0, 0, 1, 1], [], []>} : vector<512x8xbf16>, vector<8x96xbf16>, vector<512x96xf32> -> vector<512x96xf32>
    %c0_3 = arith.constant 0 : index
    %c0_4 = arith.constant 0 : index
    %3 = vector.load %arg3[%c0_3, %c0_4] : memref<1x96xf32, #tpu.memory_space<vmem>>, vector<1x96xf32>
    %4 = vector.broadcast %3 : vector<1x96xf32> to vector<512x96xf32>
    %5 = arith.addf %2, %4 : vector<512x96xf32>
    %c0_5 = arith.constant 0 : index
    %c0_6 = arith.constant 0 : index
    %6 = vector.load %arg4[%c0_5, %c0_6] : memref<512x96xf32, #tpu.memory_space<vmem>>, vector<512x96xf32>
    tpu.vector_store %arg4[%c0_5, %c0_6], %5 {strides = array<i32>} : memref<512x96xf32, #tpu.memory_space<vmem>>, vector<512x96xf32>,
    return
  }
  func.func @transform_0(%arg0: i32) -> (i32, i32) {
    %c0_i32 = arith.constant 0 : i32
    %c0_i32_0 = arith.constant 0 : i32
    return %arg0, %c0_i32 : i32, i32
  }
  func.func @transform_1(%arg0: i32) -> (i32, i32) {
    %c0_i32 = arith.constant 0 : i32
    %c0_i32_0 = arith.constant 0 : i32
    %c0_i32_1 = arith.constant 0 : i32
    return %c0_i32, %c0_i32_0 : i32, i32
  }
  func.func @transform_2(%arg0: i32) -> (i32, i32) {
    %c0_i32 = arith.constant 0 : i32
    %c0_i32_0 = arith.constant 0 : i32
    %c0_i32_1 = arith.constant 0 : i32
    return %c0_i32, %c0_i32_0 : i32, i32
  }
  func.func @transform_3(%arg0: i32) -> (i32, i32) {
    %c0_i32 = arith.constant 0 : i32
    %c0_i32_0 = arith.constant 0 : i32
    return %arg0, %c0_i32 : i32, i32
  }
}

</mosaic_0001>

<bundles_post_ra>
// kernel: tpu_custom_call.1
= control target key start
LH: loop header
LB: loop body
LE: loop exit
PB: predicated region body
PF: predicated region fallthrough
CT: control target
= control target key end

     0   :  { %8 = vsyncpa [#allocation3], 0  ;;  %s1667_s0 = inlined_call_operand.vmem [shape: bf16[10240,8], index: 0, kind: input, shape index: {}]   ;;  %s1668_s1 = inlined_call_operand.hbm [shape: bf16[8,96], index: 1, kind: input, shape index: {}]   ;;  %s1669_s2 = inlined_call_operand.hbm [shape: f32[1,96], index: 2, kind: input, shape index: {}]   ;;  %s1670_s3 = inlined_call_operand.vmem [shape: f32[10240,96], index: 3, kind: output, shape index: {}]  }
   0x1   :  { %9 = vsyncpa [#allocation5], 0  ;;  %s1304_s12 = smov 0  }
   0x2 LB: > { %s966_s13 = sadd.s32 4294967295, %s1280_s12   ;;  %p968_p0 = scmp.ge.s32.totalorder %s1280_s12, 1  ;;  %s1280_s12 = sphi %s1304_s12, %s15_s12  }
   0x3   : > { %p114_p1 = scmp.lt.s32.totalorder %s1280_s12, 21  ;;  %p1314_p2 = scmp.eq.s32.totalorder %s966_s13, 0 }
   0x4   : > { %s1282_s16 = smov [#allocation2]   ;;  %s1283_s18 = smov [#allocation4]  }
   0x5   : > { %s1674_s14 = scalar_select %p1314_p2, 1, 0 }
   0x6   : > { %p1318_p3 = pnand %p968_p0, %p114_p1  ;;  %s127_s17 = sshll.u32 %s1282_s16, 4  ;;  %s128_s17 = int_to_ptr.vmem [resolvable:$true] %s127_s17 }
   0x7   : > { %s138_s19 = sshll.u32 %s1283_s18, 4  ;;  %s1210_s23 = scalar_lea.hbm %s1668_s1, 64  ;;  %s1330_s19 = int_to_ptr.vmem [resolvable:$true] %s138_s19 }
   0x8   : > { %s1675_s15 = scalar_select %p1318_p3, 1, 0 }
   0x9   : > { %p1157_p4 = pneg %p1318_p3  ;;  %p1211_p6 = scmp.ne.s32.totalorder %s1668_s1, %s1210_s23 }
   0xa   : > { %p1217_p10 = scmp.lt.u32.totalorder %s1210_s23, %s1668_s1 }
   0xb   : > { %p1326_p5 = pnand %p1314_p2, %p1157_p4 }
   0xd   : > { %p1212_p7 = pneg %p1326_p5 }
   0xf   : > { %p1213_p8 = pnand %p1212_p7, %p1211_p6 }
  0x11   : > { %p1214_p9 = pneg %p1213_p8 }
  0x13   : > { %p1219_p11 = pnand %p1217_p10, %p1214_p9 }
  0x15   : > { %1222 = shalt.err (!%p1219_p11)
}
  0x16   : > { %s1223_s28 = scalar_lea.vmem %s128_s17, 64  ;;  %p1231_p1 = scmp.lt.s32.totalorder %s128_s17, %s128_s17 }
  0x17   : > { %p1224_p12 = scmp.ne.s32.totalorder %s128_s17, %s1223_s28  ;;  %p1232_p4 = scmp.lt.s32.totalorder %s1223_s28, %s1223_s28 }
  0x19   : > { %p1226_p13 = pnand %p1224_p12, %p1212_p7  ;;  %p1233_p2 = por %p1232_p4, %p1231_p1 }
  0x1b   : > { %p1227_p0 = pneg %p1226_p13 }
  0x1d   : > { %p1234_p3 = pnand %p1233_p2, %p1227_p0 }
  0x1f   : > { %1237 = shalt.err (!%p1234_p3)
}
  0x20   : > { %1160 = dma.hbm_to_vmem [thread:$0]  (!%p1326_p5), %s1668_s1, 64, %s128_s17, [#allocation3]  }
  0x21   : > { %s1238_s6 = scalar_lea.hbm %s1669_s2, 16 }
  0x22   : > { %p1239_p6 = scmp.ne.s32.totalorder %s1669_s2, %s1238_s6  ;;  %p1245_p3 = scmp.lt.u32.totalorder %s1238_s6, %s1669_s2 }
  0x24   : > { %p1241_p8 = pnand %p1239_p6, %p1212_p7 }
  0x26   : > { %p1242_p2 = pneg %p1241_p8 }
  0x28   : > { %p1247_p9 = pnand %p1245_p3, %p1242_p2 }
  0x2a   : > { %1250 = shalt.err (!%p1247_p9)
}
  0x2b   : > { %s1251_s11 = scalar_lea.vmem %s1330_s19, 16  ;;  %s1258_s16 = scalar_lea.vmem %s1330_s19, 32 }
  0x2c   : > { %p1252_p10 = scmp.ne.s32.totalorder %s1330_s19, %s1251_s11  ;;  %p1259_p13 = scmp.lt.s32.totalorder %s1330_s19, %s1330_s19 }
  0x2d   : > { %p1260_p0 = scmp.lt.s32.totalorder %s1258_s16, %s1251_s11 }
  0x2e   : > { %p1254_p11 = pnand %p1252_p10, %p1212_p7 }
  0x2f   : > { %p1261_p1 = por %p1260_p0, %p1259_p13 }
  0x30   : > { %p1255_p12 = pneg %p1254_p11 }
  0x32   : > { %p1262_p4 = pnand %p1261_p1, %p1255_p12 }
  0x34   : > { %1265 = shalt.err (!%p1262_p4)
}
  0x35   : > { %1163 = dma.hbm_to_vmem [thread:$0]  (!%p1326_p5), %s1669_s2, 16, %s1330_s19, [#allocation5]  }
  0x36   : > { %p1677_p6 = scmp.ne.s32.totalorder %s1675_s15, 0 }
  0x37   : > { %p1678_p7 = scmp.ne.s32.totalorder (!%p1677_p6), %s1674_s14, 0 }
  0x38   : > { %160 = sbr.rel (%p1677_p6) target bundleno = 349 (0x15d), region = 32 }
  0x3f   : > { %1271 = dma.done.wait (%p1678_p7), [#allocation3], 64  }
  0x40   : > { %1273 = vsyncadd (%p1678_p7), [#allocation3], 4294967232 }
  0x41   : > { %1275 = dma.done.wait (%p1678_p7), [#allocation5], 16  }
  0x42   : > { %1277 = vsyncadd (%p1678_p7), [#allocation5], 4294967280  ;;  %s975_s20 = sshll.u32 %s966_s13, 6  ;;  %vm530_vm0 = vcmask 1043456   ;;  %vm433_vm1 = vcmask 64512   ;;  %vm823_vm2 = vcmask 785408  }
  0x43   : > { %p189_p8 = scmp.lt.s32.totalorder %s975_s20, 1279  ;;  %v265_v0 = vld [vmem:[#allocation2] sm:$0xf]  ;;  %v1465_v34 = vld [vmem:[#allocation4] ss:$0 sm:$0xff] }
  0x44   : > { %1147 = vmatprep.subr.msk.bf16.mxu0 %vm530_vm0, %v265_v0  ;;  %1148 = vmatprep.subr.msk.bf16.mxu1 %vm530_vm0, %v265_v0  ;;  %v532_v1 = vsel %vm530_vm0, %v265_v0, 0 }
  0x45   : > { %s1680_s20 = smov (!%p189_p8, %s975_s20), 1279  ;;  %1080 = vmatpush3.bf16.msra.mxu0 %v532_v1  ;;  %1146 = vmatpush3.bf16.msra.mxu1 %v532_v1 }
  0x46   : > { %s976_s15 = sshll.u32 %s1680_s20, 2  ;;  %s978_s13 = sshll.u32 %s1680_s20, 3 }
  0x47   : > { %s1398_s22 = scalar_lea.vmem %s1667_s0, %s976_s15  ;;  %s1470_s24 = scalar_lea.vmem %s1670_s3, %s978_s13 }
  0x48   : > { %v1178_v2 = vld [vmem:[%s1398_s22] sm:$0xff]   ;;  %v1180_v4 = vld [vmem:[%s1398_s22 + $0x8] sm:$0xff]   ;;  %v1182_v6 = vld [vmem:[%s1398_s22 + $0x10] sm:$0xff]  }
  0x49   : > { %v1179_v3 = vld [vmem:[%s1398_s22 + $0x80] sm:$0xff]   ;;  %1081 = vmatprep.mubr.msk.bf16.mxu0 %vm433_vm1, %v1178_v2  ;;  %v1181_v5 = vld [vmem:[%s1398_s22 + $0x88] sm:$0xff]   ;;  %v1183_v7 = vld [vmem:[%s1398_s22 + $0x90] sm:$0xff]  }
  0x4a   : > { %1113 = vmatprep.mubr.msk.bf16.mxu1 %vm433_vm1, %v1179_v3  ;;  %1082 = vmatmul.mubr.msk.bf16.vlgmr.msra.gmra.mrb[0].mxu0 %vm433_vm1, %v1180_v4  ;;  %v1184_v8 = vld [vmem:[%s1398_s22 + $0x18] sm:$0xff]   ;;  %v1186_v10 = vld [vmem:[%s1398_s22 + $0x20] sm:$0xff]   ;;  %v1188_v12 = vld [vmem:[%s1398_s22 + $0x28] sm:$0xff]  }
  0x4b   : > { %1114 = vmatmul.mubr.msk.bf16.vlgmr.msra.gmra.mrb[0].mxu1 %vm433_vm1, %v1181_v5  ;;  %1085 = vmatprep.mubr.msk.bf16.mxu0 %vm433_vm1, %v1182_v6  ;;  %v1185_v9 = vld [vmem:[%s1398_s22 + $0x98] sm:$0xff]   ;;  %v1187_v11 = vld [vmem:[%s1398_s22 + $0xa0] sm:$0xff]   ;;  %v1189_v13 = vld [vmem:[%s1398_s22 + $0xa8] sm:$0xff]  }
  0x4c   : > { %1117 = vmatprep.mubr.msk.bf16.mxu1 %vm433_vm1, %v1183_v7  ;;  %v1190_v14 = vld [vmem:[%s1398_s22 + $0x30] sm:$0xff]   ;;  %v1192_v16 = vld [vmem:[%s1398_s22 + $0x38] sm:$0xff]   ;;  %v1194_v18 = vld [vmem:[%s1398_s22 + $0x40] sm:$0xff]  }
  0x4d   : > { %v1191_v15 = vld [vmem:[%s1398_s22 + $0xb0] sm:$0xff]   ;;  %v1193_v17 = vld [vmem:[%s1398_s22 + $0xb8] sm:$0xff]   ;;  %v1195_v19 = vld [vmem:[%s1398_s22 + $0xc0] sm:$0xff]  }
  0x4e   : > { %v1196_v20 = vld [vmem:[%s1398_s22 + $0x48] sm:$0xff]   ;;  %v1198_v22 = vld [vmem:[%s1398_s22 + $0x50] sm:$0xff]   ;;  %v1200_v24 = vld [vmem:[%s1398_s22 + $0x58] sm:$0xff]  }
  0x4f   : > { %v1197_v21 = vld [vmem:[%s1398_s22 + $0xc8] sm:$0xff]   ;;  %v1199_v23 = vld [vmem:[%s1398_s22 + $0xd0] sm:$0xff]   ;;  %v1201_v25 = vld [vmem:[%s1398_s22 + $0xd8] sm:$0xff]  }
  0x50   : > { %v1202_v26 = vld [vmem:[%s1398_s22 + $0x60] sm:$0xff]   ;;  %v1204_v28 = vld [vmem:[%s1398_s22 + $0x68] sm:$0xff]   ;;  %v1206_v30 = vld [vmem:[%s1398_s22 + $0x70] sm:$0xff]  }
  0x51   : > { %v1203_v27 = vld [vmem:[%s1398_s22 + $0xe0] sm:$0xff]   ;;  %v1205_v29 = vld [vmem:[%s1398_s22 + $0xe8] sm:$0xff]   ;;  %v1207_v31 = vld [vmem:[%s1398_s22 + $0xf0] sm:$0xff]  }
  0x52   : > { %1086 = vmatmul.mubr.msk.bf16.gmra.mrb[4].mxu0 %vm433_vm1, %v1184_v8  ;;  %v1208_v32 = vld [vmem:[%s1398_s22 + $0x78] sm:$0xff]  }
  0x53   : > { %1118 = vmatmul.mubr.msk.bf16.gmra.mrb[4].mxu1 %vm433_vm1, %v1185_v9  ;;  %1089 = vmatprep.mubr.msk.bf16.mxu0 %vm433_vm1, %v1186_v10  ;;  %v1209_v33 = vld [vmem:[%s1398_s22 + $0xf8] sm:$0xff]  }
  0x54   : > { %1121 = vmatprep.mubr.msk.bf16.mxu1 %vm433_vm1, %v1187_v11 }
  0x5a   : > { %1090 = vmatmul.mubr.msk.bf16.gmra.mrb[8].mxu0 %vm433_vm1, %v1188_v12 }
  0x5b   : > { %1122 = vmatmul.mubr.msk.bf16.gmra.mrb[8].mxu1 %vm433_vm1, %v1189_v13  ;;  %1093 = vmatprep.mubr.msk.bf16.mxu0 %vm433_vm1, %v1190_v14 }
  0x5c   : > { %1125 = vmatprep.mubr.msk.bf16.mxu1 %vm433_vm1, %v1191_v15 }
  0x62   : > { %1094 = vmatmul.mubr.msk.bf16.gmra.mrb[12].mxu0 %vm433_vm1, %v1192_v16 }
  0x63   : > { %1126 = vmatmul.mubr.msk.bf16.gmra.mrb[12].mxu1 %vm433_vm1, %v1193_v17  ;;  %1097 = vmatprep.mubr.msk.bf16.mxu0 %vm433_vm1, %v1194_v18 }
  0x64   : > { %1129 = vmatprep.mubr.msk.bf16.mxu1 %vm433_vm1, %v1195_v19 }
  0x6a   : > { %1098 = vmatmul.mubr.msk.bf16.gmra.mrb[16].mxu0 %vm433_vm1, %v1196_v20 }
  0x6b   : > { %1130 = vmatmul.mubr.msk.bf16.gmra.mrb[16].mxu1 %vm433_vm1, %v1197_v21  ;;  %1101 = vmatprep.mubr.msk.bf16.mxu0 %vm433_vm1, %v1198_v22 }
  0x6c   : > { %1133 = vmatprep.mubr.msk.bf16.mxu1 %vm433_vm1, %v1199_v23 }
  0x72   : > { %1102 = vmatmul.mubr.msk.bf16.gmra.mrb[20].mxu0 %vm433_vm1, %v1200_v24 }
  0x73   : > { %1134 = vmatmul.mubr.msk.bf16.gmra.mrb[20].mxu1 %vm433_vm1, %v1201_v25  ;;  %1105 = vmatprep.mubr.msk.bf16.mxu0 %vm433_vm1, %v1202_v26 }
  0x74   : > { %1137 = vmatprep.mubr.msk.bf16.mxu1 %vm433_vm1, %v1203_v27 }
  0x7a   : > { %1106 = vmatmul.mubr.msk.bf16.gmra.mrb[24].mxu0 %vm433_vm1, %v1204_v28 }
  0x7b   : > { %1138 = vmatmul.mubr.msk.bf16.gmra.mrb[24].mxu1 %vm433_vm1, %v1205_v29  ;;  %1109 = vmatprep.mubr.msk.bf16.mxu0 %vm433_vm1, %v1206_v30 }
  0x7c   : > { %1141 = vmatprep.mubr.msk.bf16.mxu1 %vm433_vm1, %v1207_v31 }
  0x82   : > { %1110 = vmatmul.mubr.msk.bf16.gmra.mrb[28].mxu0 %vm433_vm1, %v1208_v32 }
  0x83   : > { %1142 = vmatmul.mubr.msk.bf16.gmra.mrb[28].mxu1 %vm433_vm1, %v1209_v33 }
 0x11d   : > { %v1083_v35 = vpop.f32.mrb[0].mxu0 }
 0x11e   : > { %v577_v36 = vadd.f32 %v1083_v35, %v1465_v34  ;;  %v1115_v37 = vpop.f32.mrb[0].mxu1  ;;  %v568_v38 = vpop.f32.mrb[1].mxu0 }
 0x11f   : > { %v705_v39 = vadd.f32 %v1115_v37, %v1465_v34  ;;  %v569_v40 = vadd.f32 %v1465_v34, %v568_v38  ;;  %v696_v41 = vpop.f32.mrb[1].mxu1  ;;  %v1084_v42 = vpop.f32.mrb[2].mxu0 }
 0x120   : > { %826 = vst.msk [vmem:[%s1470_s24 + $0x10] sm:$0xff] %vm823_vm2, %v577_v36  ;;  %v697_v43 = vadd.f32 %v1465_v34, %v696_v41  ;;  %v580_v44 = vadd.f32 %v1084_v42, %v1465_v34  ;;  %v1116_v45 = vpop.f32.mrb[2].mxu1  ;;  %v571_v46 = vpop.f32.mrb[3].mxu0 }
 0x121   : > { %858 = vst.msk [vmem:[%s1470_s24 + $0x110] sm:$0xff] %vm823_vm2, %v705_v39  ;;  %824 = vst.msk [vmem:[%s1470_s24] sm:$0xff] %vm823_vm2, %v569_v40  ;;  %v708_v47 = vadd.f32 %v1116_v45, %v1465_v34  ;;  %v572_v48 = vadd.f32 %v1465_v34, %v571_v46  ;;  %v699_v49 = vpop.f32.mrb[3].mxu1 }
 0x122   : > { %856 = vst.msk [vmem:[%s1470_s24 + $0x100] sm:$0xff] %vm823_vm2, %v697_v43  ;;  %827 = vst.msk [vmem:[%s1470_s24 + $0x18] sm:$0xff] %vm823_vm2, %v580_v44  ;;  %v700_v50 = vadd.f32 %v1465_v34, %v699_v49 }
 0x123   : > { %859 = vst.msk [vmem:[%s1470_s24 + $0x118] sm:$0xff] %vm823_vm2, %v708_v47  ;;  %825 = vst.msk [vmem:[%s1470_s24 + $0x8] sm:$0xff] %vm823_vm2, %v572_v48 }
 0x124   : > { %857 = vst.msk [vmem:[%s1470_s24 + $0x108] sm:$0xff] %vm823_vm2, %v700_v50 }
 0x125   : > { %v1087_v51 = vpop.f32.mrb[4].mxu0 }
 0x126   : > { %v593_v52 = vadd.f32 %v1087_v51, %v1465_v34  ;;  %v1119_v53 = vpop.f32.mrb[4].mxu1  ;;  %v584_v54 = vpop.f32.mrb[5].mxu0 }
 0x127   : > { %v721_v55 = vadd.f32 %v1119_v53, %v1465_v34  ;;  %v585_v56 = vadd.f32 %v1465_v34, %v584_v54  ;;  %v712_v57 = vpop.f32.mrb[5].mxu1  ;;  %v1088_v58 = vpop.f32.mrb[6].mxu0 }
 0x128   : > { %830 = vst.msk [vmem:[%s1470_s24 + $0x30] sm:$0xff] %vm823_vm2, %v593_v52  ;;  %v713_v59 = vadd.f32 %v1465_v34, %v712_v57  ;;  %v596_v60 = vadd.f32 %v1088_v58, %v1465_v34  ;;  %v1120_v61 = vpop.f32.mrb[6].mxu1  ;;  %v587_v62 = vpop.f32.mrb[7].mxu0 }
 0x129   : > { %862 = vst.msk [vmem:[%s1470_s24 + $0x130] sm:$0xff] %vm823_vm2, %v721_v55  ;;  %828 = vst.msk [vmem:[%s1470_s24 + $0x20] sm:$0xff] %vm823_vm2, %v585_v56  ;;  %v724_v63 = vadd.f32 %v1120_v61, %v1465_v34  ;;  %v588_v0 = vadd.f32 %v1465_v34, %v587_v62  ;;  %v715_v1 = vpop.f32.mrb[7].mxu1 }
 0x12a   : > { %860 = vst.msk [vmem:[%s1470_s24 + $0x120] sm:$0xff] %vm823_vm2, %v713_v59  ;;  %831 = vst.msk [vmem:[%s1470_s24 + $0x38] sm:$0xff] %vm823_vm2, %v596_v60  ;;  %v716_v2 = vadd.f32 %v1465_v34, %v715_v1 }
 0x12b   : > { %863 = vst.msk [vmem:[%s1470_s24 + $0x138] sm:$0xff] %vm823_vm2, %v724_v63  ;;  %829 = vst.msk [vmem:[%s1470_s24 + $0x28] sm:$0xff] %vm823_vm2, %v588_v0 }
 0x12c   : > { %861 = vst.msk [vmem:[%s1470_s24 + $0x128] sm:$0xff] %vm823_vm2, %v716_v2 }
 0x12d   : > { %v1091_v3 = vpop.f32.mrb[8].mxu0 }
 0x12e   : > { %v609_v4 = vadd.f32 %v1091_v3, %v1465_v34  ;;  %v1123_v5 = vpop.f32.mrb[8].mxu1  ;;  %v600_v6 = vpop.f32.mrb[9].mxu0 }
 0x12f   : > { %v737_v7 = vadd.f32 %v1123_v5, %v1465_v34  ;;  %v601_v8 = vadd.f32 %v1465_v34, %v600_v6  ;;  %v728_v9 = vpop.f32.mrb[9].mxu1  ;;  %v1092_v10 = vpop.f32.mrb[10].mxu0 }
 0x130   : > { %834 = vst.msk [vmem:[%s1470_s24 + $0x50] sm:$0xff] %vm823_vm2, %v609_v4  ;;  %v729_v11 = vadd.f32 %v1465_v34, %v728_v9  ;;  %v612_v12 = vadd.f32 %v1092_v10, %v1465_v34  ;;  %v1124_v13 = vpop.f32.mrb[10].mxu1  ;;  %v603_v14 = vpop.f32.mrb[11].mxu0 }
 0x131   : > { %866 = vst.msk [vmem:[%s1470_s24 + $0x150] sm:$0xff] %vm823_vm2, %v737_v7  ;;  %832 = vst.msk [vmem:[%s1470_s24 + $0x40] sm:$0xff] %vm823_vm2, %v601_v8  ;;  %v740_v15 = vadd.f32 %v1124_v13, %v1465_v34  ;;  %v604_v16 = vadd.f32 %v1465_v34, %v603_v14  ;;  %v731_v17 = vpop.f32.mrb[11].mxu1 }
 0x132   : > { %864 = vst.msk [vmem:[%s1470_s24 + $0x140] sm:$0xff] %vm823_vm2, %v729_v11  ;;  %835 = vst.msk [vmem:[%s1470_s24 + $0x58] sm:$0xff] %vm823_vm2, %v612_v12  ;;  %v732_v18 = vadd.f32 %v1465_v34, %v731_v17 }
 0x133   : > { %867 = vst.msk [vmem:[%s1470_s24 + $0x158] sm:$0xff] %vm823_vm2, %v740_v15  ;;  %833 = vst.msk [vmem:[%s1470_s24 + $0x48] sm:$0xff] %vm823_vm2, %v604_v16 }
 0x134   : > { %865 = vst.msk [vmem:[%s1470_s24 + $0x148] sm:$0xff] %vm823_vm2, %v732_v18 }
 0x135   : > { %v1095_v19 = vpop.f32.mrb[12].mxu0 }
 0x136   : > { %v625_v20 = vadd.f32 %v1095_v19, %v1465_v34  ;;  %v1127_v21 = vpop.f32.mrb[12].mxu1  ;;  %v616_v22 = vpop.f32.mrb[13].mxu0 }
 0x137   : > { %v753_v23 = vadd.f32 %v1127_v21, %v1465_v34  ;;  %v617_v24 = vadd.f32 %v1465_v34, %v616_v22  ;;  %v744_v25 = vpop.f32.mrb[13].mxu1  ;;  %v1096_v26 = vpop.f32.mrb[14].mxu0 }
 0x138   : > { %838 = vst.msk [vmem:[%s1470_s24 + $0x70] sm:$0xff] %vm823_vm2, %v625_v20  ;;  %v745_v27 = vadd.f32 %v1465_v34, %v744_v25  ;;  %v628_v28 = vadd.f32 %v1096_v26, %v1465_v34  ;;  %v1128_v29 = vpop.f32.mrb[14].mxu1  ;;  %v619_v30 = vpop.f32.mrb[15].mxu0 }
 0x139   : > { %870 = vst.msk [vmem:[%s1470_s24 + $0x170] sm:$0xff] %vm823_vm2, %v753_v23  ;;  %836 = vst.msk [vmem:[%s1470_s24 + $0x60] sm:$0xff] %vm823_vm2, %v617_v24  ;;  %v756_v31 = vadd.f32 %v1128_v29, %v1465_v34  ;;  %v620_v32 = vadd.f32 %v1465_v34, %v619_v30  ;;  %v747_v33 = vpop.f32.mrb[15].mxu1 }
 0x13a   : > { %868 = vst.msk [vmem:[%s1470_s24 + $0x160] sm:$0xff] %vm823_vm2, %v745_v27  ;;  %839 = vst.msk [vmem:[%s1470_s24 + $0x78] sm:$0xff] %vm823_vm2, %v628_v28  ;;  %v748_v35 = vadd.f32 %v1465_v34, %v747_v33 }
 0x13b   : > { %871 = vst.msk [vmem:[%s1470_s24 + $0x178] sm:$0xff] %vm823_vm2, %v756_v31  ;;  %837 = vst.msk [vmem:[%s1470_s24 + $0x68] sm:$0xff] %vm823_vm2, %v620_v32 }
 0x13c   : > { %869 = vst.msk [vmem:[%s1470_s24 + $0x168] sm:$0xff] %vm823_vm2, %v748_v35 }
 0x13d   : > { %v1099_v36 = vpop.f32.mrb[16].mxu0 }
 0x13e   : > { %v641_v37 = vadd.f32 %v1099_v36, %v1465_v34  ;;  %v1131_v38 = vpop.f32.mrb[16].mxu1  ;;  %v632_v39 = vpop.f32.mrb[17].mxu0 }
 0x13f   : > { %v769_v40 = vadd.f32 %v1131_v38, %v1465_v34  ;;  %v633_v41 = vadd.f32 %v1465_v34, %v632_v39  ;;  %v760_v42 = vpop.f32.mrb[17].mxu1  ;;  %v1100_v43 = vpop.f32.mrb[18].mxu0 }
 0x140   : > { %842 = vst.msk [vmem:[%s1470_s24 + $0x90] sm:$0xff] %vm823_vm2, %v641_v37  ;;  %v761_v44 = vadd.f32 %v1465_v34, %v760_v42  ;;  %v644_v45 = vadd.f32 %v1100_v43, %v1465_v34  ;;  %v1132_v46 = vpop.f32.mrb[18].mxu1  ;;  %v635_v47 = vpop.f32.mrb[19].mxu0 }
 0x141   : > { %874 = vst.msk [vmem:[%s1470_s24 + $0x190] sm:$0xff] %vm823_vm2, %v769_v40  ;;  %840 = vst.msk [vmem:[%s1470_s24 + $0x80] sm:$0xff] %vm823_vm2, %v633_v41  ;;  %v772_v48 = vadd.f32 %v1132_v46, %v1465_v34  ;;  %v636_v49 = vadd.f32 %v1465_v34, %v635_v47  ;;  %v763_v50 = vpop.f32.mrb[19].mxu1 }
 0x142   : > { %872 = vst.msk [vmem:[%s1470_s24 + $0x180] sm:$0xff] %vm823_vm2, %v761_v44  ;;  %843 = vst.msk [vmem:[%s1470_s24 + $0x98] sm:$0xff] %vm823_vm2, %v644_v45  ;;  %v764_v51 = vadd.f32 %v1465_v34, %v763_v50 }
 0x143   : > { %875 = vst.msk [vmem:[%s1470_s24 + $0x198] sm:$0xff] %vm823_vm2, %v772_v48  ;;  %841 = vst.msk [vmem:[%s1470_s24 + $0x88] sm:$0xff] %vm823_vm2, %v636_v49 }
 0x144   : > { %873 = vst.msk [vmem:[%s1470_s24 + $0x188] sm:$0xff] %vm823_vm2, %v764_v51 }
 0x145   : > { %v1103_v52 = vpop.f32.mrb[20].mxu0 }
 0x146   : > { %v657_v53 = vadd.f32 %v1103_v52, %v1465_v34  ;;  %v1135_v54 = vpop.f32.mrb[20].mxu1  ;;  %v648_v55 = vpop.f32.mrb[21].mxu0 }
 0x147   : > { %v785_v56 = vadd.f32 %v1135_v54, %v1465_v34  ;;  %v649_v57 = vadd.f32 %v1465_v34, %v648_v55  ;;  %v776_v58 = vpop.f32.mrb[21].mxu1  ;;  %v1104_v59 = vpop.f32.mrb[22].mxu0 }
 0x148   : > { %846 = vst.msk [vmem:[%s1470_s24 + $0xb0] sm:$0xff] %vm823_vm2, %v657_v53  ;;  %v777_v60 = vadd.f32 %v1465_v34, %v776_v58  ;;  %v660_v61 = vadd.f32 %v1104_v59, %v1465_v34  ;;  %v1136_v62 = vpop.f32.mrb[22].mxu1  ;;  %v651_v63 = vpop.f32.mrb[23].mxu0 }
 0x149   : > { %878 = vst.msk [vmem:[%s1470_s24 + $0x1b0] sm:$0xff] %vm823_vm2, %v785_v56  ;;  %844 = vst.msk [vmem:[%s1470_s24 + $0xa0] sm:$0xff] %vm823_vm2, %v649_v57  ;;  %v788_v0 = vadd.f32 %v1136_v62, %v1465_v34  ;;  %v652_v1 = vadd.f32 %v1465_v34, %v651_v63  ;;  %v779_v2 = vpop.f32.mrb[23].mxu1 }
 0x14a   : > { %876 = vst.msk [vmem:[%s1470_s24 + $0x1a0] sm:$0xff] %vm823_vm2, %v777_v60  ;;  %847 = vst.msk [vmem:[%s1470_s24 + $0xb8] sm:$0xff] %vm823_vm2, %v660_v61  ;;  %v780_v3 = vadd.f32 %v1465_v34, %v779_v2 }
 0x14b   : > { %879 = vst.msk [vmem:[%s1470_s24 + $0x1b8] sm:$0xff] %vm823_vm2, %v788_v0  ;;  %845 = vst.msk [vmem:[%s1470_s24 + $0xa8] sm:$0xff] %vm823_vm2, %v652_v1 }
 0x14c   : > { %877 = vst.msk [vmem:[%s1470_s24 + $0x1a8] sm:$0xff] %vm823_vm2, %v780_v3 }
 0x14d   : > { %v1107_v4 = vpop.f32.mrb[24].mxu0 }
 0x14e   : > { %v673_v5 = vadd.f32 %v1107_v4, %v1465_v34  ;;  %v1139_v6 = vpop.f32.mrb[24].mxu1  ;;  %v664_v7 = vpop.f32.mrb[25].mxu0 }
 0x14f   : > { %v801_v8 = vadd.f32 %v1139_v6, %v1465_v34  ;;  %v665_v9 = vadd.f32 %v1465_v34, %v664_v7  ;;  %v792_v10 = vpop.f32.mrb[25].mxu1  ;;  %v1108_v11 = vpop.f32.mrb[26].mxu0 }
 0x150   : > { %850 = vst.msk [vmem:[%s1470_s24 + $0xd0] sm:$0xff] %vm823_vm2, %v673_v5  ;;  %v793_v12 = vadd.f32 %v1465_v34, %v792_v10  ;;  %v676_v13 = vadd.f32 %v1108_v11, %v1465_v34  ;;  %v1140_v14 = vpop.f32.mrb[26].mxu1  ;;  %v667_v15 = vpop.f32.mrb[27].mxu0 }
 0x151   : > { %882 = vst.msk [vmem:[%s1470_s24 + $0x1d0] sm:$0xff] %vm823_vm2, %v801_v8  ;;  %848 = vst.msk [vmem:[%s1470_s24 + $0xc0] sm:$0xff] %vm823_vm2, %v665_v9  ;;  %v804_v16 = vadd.f32 %v1140_v14, %v1465_v34  ;;  %v668_v17 = vadd.f32 %v1465_v34, %v667_v15  ;;  %v795_v18 = vpop.f32.mrb[27].mxu1 }
 0x152   : > { %880 = vst.msk [vmem:[%s1470_s24 + $0x1c0] sm:$0xff] %vm823_vm2, %v793_v12  ;;  %851 = vst.msk [vmem:[%s1470_s24 + $0xd8] sm:$0xff] %vm823_vm2, %v676_v13  ;;  %v796_v19 = vadd.f32 %v1465_v34, %v795_v18 }
 0x153   : > { %883 = vst.msk [vmem:[%s1470_s24 + $0x1d8] sm:$0xff] %vm823_vm2, %v804_v16  ;;  %849 = vst.msk [vmem:[%s1470_s24 + $0xc8] sm:$0xff] %vm823_vm2, %v668_v17 }
 0x154   : > { %881 = vst.msk [vmem:[%s1470_s24 + $0x1c8] sm:$0xff] %vm823_vm2, %v796_v19 }
 0x155   : > { %v1111_v20 = vpop.f32.mrb[28].mxu0 }
 0x156   : > { %v689_v21 = vadd.f32 %v1111_v20, %v1465_v34  ;;  %v1143_v22 = vpop.f32.mrb[28].mxu1  ;;  %v680_v23 = vpop.f32.mrb[29].mxu0 }
 0x157   : > { %v817_v24 = vadd.f32 %v1143_v22, %v1465_v34  ;;  %v681_v25 = vadd.f32 %v1465_v34, %v680_v23  ;;  %v808_v26 = vpop.f32.mrb[29].mxu1  ;;  %v1112_v27 = vpop.f32.mrb[30].mxu0 }
 0x158   : > { %854 = vst.msk [vmem:[%s1470_s24 + $0xf0] sm:$0xff] %vm823_vm2, %v689_v21  ;;  %v809_v28 = vadd.f32 %v1465_v34, %v808_v26  ;;  %v692_v29 = vadd.f32 %v1112_v27, %v1465_v34  ;;  %v1144_v30 = vpop.f32.mrb[30].mxu1  ;;  %v683_v31 = vpop.f32.mrb[31].mxu0 }
 0x159   : > { %886 = vst.msk [vmem:[%s1470_s24 + $0x1f0] sm:$0xff] %vm823_vm2, %v817_v24  ;;  %852 = vst.msk [vmem:[%s1470_s24 + $0xe0] sm:$0xff] %vm823_vm2, %v681_v25  ;;  %v820_v32 = vadd.f32 %v1144_v30, %v1465_v34  ;;  %v684_v33 = vadd.f32 %v1465_v34, %v683_v31  ;;  %v811_v35 = vpop.f32.mrb[31].mxu1 }
 0x15a   : > { %884 = vst.msk [vmem:[%s1470_s24 + $0x1e0] sm:$0xff] %vm823_vm2, %v809_v28  ;;  %855 = vst.msk [vmem:[%s1470_s24 + $0xf8] sm:$0xff] %vm823_vm2, %v692_v29  ;;  %v812_v36 = vadd.f32 %v1465_v34, %v811_v35 }
 0x15b   : > { %887 = vst.msk [vmem:[%s1470_s24 + $0x1f8] sm:$0xff] %vm823_vm2, %v820_v32  ;;  %853 = vst.msk [vmem:[%s1470_s24 + $0xe8] sm:$0xff] %vm823_vm2, %v684_v33 }
 0x15c   : > { %885 = vst.msk [vmem:[%s1470_s24 + $0x1e8] sm:$0xff] %vm823_vm2, %v812_v36 }
 0x15d PF: > { %s15_s12 = sadd.s32 1, %s1280_s12  }
 0x15e   : > { %p12_p5 = scmp.ge.s32.totalorder %s15_s12, 22  }
 0x160   :  { %14 = sbr.rel (!%p12_p5) target bundleno = 2 (0x2), region = 71 }
 0x167   :  { %910 = vsyncpa [#allocation3], 1 }
 0x168   :  { %912 = vsyncpa [#allocation3 + $0x1], 1 }
 0x169   :  { %913 = vsyncpa [#allocation5], 1 }

</bundles_post_ra>
